<compile_context>
chip_gen: v5e
topology: v5e:2x2
jax: 0.10.0
libtpu: 0.0.40
codegen_flags: <defaults>
</compile_context>

<pallas_src>
import jax
import jax.numpy as jnp
from jax.experimental import pallas as pl
from jax.experimental.pallas import tpu as pltpu


def _round_up(x, m):
    return ((x + m - 1) // m) * m


# ----------------------------- Pallas kernel ------------------------------

def gcn_kernel(a_ref, x_ref, dinv_ref, w_ref, b_ref, o_ref, acc_ref):
    k = pl.program_id(1)

    @pl.when(k == 0)
    def _():
        acc_ref[...] = jnp.zeros_like(acc_ref)

    # Aggregation at width F_in (narrow side): acc += A_hat_tile @ X'_tile.
    acc_ref[...] += jnp.dot(a_ref[...], x_ref[...],
                            preferred_element_type=jnp.float32)

    @pl.when(k == pl.num_programs(1) - 1)
    def _():
        # Left D^{-1/2} row scale, then the small feature-transform matmul,
        # bias and ReLU — all in the epilogue, outside the reduction loop.
        ax = dinv_ref[...] * acc_ref[...]                    # [tm, F_in_pad]
        h = jnp.dot(ax, w_ref[...], preferred_element_type=jnp.float32)
        h = h + b_ref[...]
        o_ref[...] = jnp.maximum(h, 0.0).astype(o_ref.dtype)


def gcn_forward_pallas(a_hat, x_scaled, dinv, w, bias, *, tm, tk):
    n_pad = a_hat.shape[0]
    f_in_pad = x_scaled.shape[1]
    f_out_pad = w.shape[1]
    grid = (n_pad // tm, n_pad // tk)
    return pl.pallas_call(
        gcn_kernel,
        out_shape=jax.ShapeDtypeStruct((n_pad, f_out_pad), jnp.float32),
        grid_spec=pltpu.PrefetchScalarGridSpec(
            num_scalar_prefetch=0,
            grid=grid,
            in_specs=[
                pl.BlockSpec((tm, tk), lambda i, k: (i, k)),            # A_hat
                pl.BlockSpec((tk, f_in_pad), lambda i, k: (k, 0)),      # X'
                pl.BlockSpec((tm, 1), lambda i, k: (i, 0)),             # dinv
                pl.BlockSpec((f_in_pad, f_out_pad), lambda i, k: (0, 0)),  # W
                pl.BlockSpec((1, f_out_pad), lambda i, k: (0, 0)),      # bias
            ],
            out_specs=pl.BlockSpec((tm, f_out_pad), lambda i, k: (i, 0)),
            scratch_shapes=[pltpu.VMEM((tm, f_in_pad), jnp.float32)],
        ),
        compiler_params=pltpu.CompilerParams(
            dimension_semantics=("parallel", "arbitrary")),
    )(a_hat, x_scaled, dinv, w, bias)


# ------------------------------- JAX glue ---------------------------------

def gcn_apply(x, edge_index, weight, bias):
    """weight: [F_out, F_in] (PyG Linear layout), bias: [F_out]."""
    n, f_in = x.shape
    f_out = weight.shape[0]

    # Generation-agnostic tile choice: <=256 (good for 256-wide MXU on
    # v6e/v7x, also a multiple of 128 for v5e), shrink for tiny graphs.
    t = min(256, _round_up(n, 128))
    n_pad = _round_up(n, t)
    f_in_pad = _round_up(f_in, 128)
    f_out_pad = _round_up(f_out, 128)

    # Dense A_hat scatter + degrees stay XLA glue (built directly padded).
    # Duplicate edges accumulate weight > 1, matching PyG's dense behavior.
    src, dst = edge_index[0], edge_index[1]
    loop = jnp.arange(n, dtype=edge_index.dtype)
    src = jnp.concatenate([src, loop])
    dst = jnp.concatenate([dst, loop])
    a_hat = jnp.zeros((n_pad, n_pad), jnp.float32).at[dst, src].add(1.0)
    deg = a_hat.sum(axis=1)
    dinv = jnp.where(deg > 0.0, jax.lax.rsqrt(deg), 0.0)      # [n_pad]

    # Right D^{-1/2} factor folded into X (tiny), left factor applied in-kernel.
    x_scaled = dinv[:n, None] * x
    x_p = jnp.zeros((n_pad, f_in_pad), jnp.bfloat16).at[:n, :f_in].set(
        x_scaled.astype(jnp.bfloat16))
    a_bf16 = a_hat.astype(jnp.bfloat16)     # small integer counts: exact in bf16
    dinv2d = dinv[:, None].astype(jnp.float32)                # [n_pad, 1]
    w_p = jnp.zeros((f_in_pad, f_out_pad), jnp.float32).at[:f_in, :f_out].set(
        weight.T.astype(jnp.float32))
    b_p = jnp.zeros((1, f_out_pad), jnp.float32).at[0, :f_out].set(
        bias.astype(jnp.float32))

    out_pad = gcn_forward_pallas(a_bf16, x_p, dinv2d, w_p, b_p, tm=t, tk=t)
    return out_pad[:n, :f_out]


# ------------------------------ reference ---------------------------------

def gcn_reference(x, edge_index, weight, bias):
    n = x.shape[0]
    src, dst = edge_index[0], edge_index[1]
    loop = jnp.arange(n, dtype=edge_index.dtype)
    src = jnp.concatenate([src, loop])
    dst = jnp.concatenate([dst, loop])
    a = jnp.zeros((n, n), jnp.float32).at[dst, src].add(1.0)
    deg = a.sum(axis=1)
    dinv = jnp.where(deg > 0.0, 1.0 / jnp.sqrt(deg), 0.0)
    a_norm = dinv[:, None] * a * dinv[None, :]
    h = a_norm @ (x @ weight.T) + bias[None, :]
    return jnp.maximum(h, 0.0)


# --------------------------------- main -----------------------------------

if __name__ == "__main__":
    num_nodes = 16
    num_in_features = 8
    num_out_features = 32
    num_edges = 24

    key = jax.random.PRNGKey(0)
    k_x, k_src, k_dst, k_w = jax.random.split(key, 4)

    x = jax.random.normal(k_x, (num_nodes, num_in_features), jnp.float32)
    edge_index = jnp.stack(
        [
            jax.random.randint(k_src, (num_edges,), 0, num_nodes),
            jax.random.randint(k_dst, (num_edges,), 0, num_nodes),
        ],
        axis=0,
    ).astype(jnp.int32)

    # Deterministic glorot-style init for GCNConv.lin.weight [F_out, F_in],
    # zero bias [F_out] (PyG default bias init is zeros).
    limit = jnp.sqrt(6.0 / (num_in_features + num_out_features))
    weight = jax.random.uniform(
        k_w, (num_out_features, num_in_features), jnp.float32, -limit, limit
    )
    bias = jnp.zeros((num_out_features,), jnp.float32)

    out = gcn_apply(x, edge_index, weight, bias)
    out = jax.block_until_ready(out)

    ref = gcn_reference(x, edge_index, weight, bias)
    assert out.shape == (num_nodes, num_out_features)
    # bf16 inputs to the aggregation matmul -> looser tolerance vs f32 ref.
    assert jnp.allclose(out, ref, atol=5e-2, rtol=5e-2)

    print("KERNEL_OK")
</pallas_src>

<mosaic_0001>
module attributes {stable_mosaic.version = 11 : i64} {
  func.func @gcn_kernel(%arg0: i32, %arg1: i32, %arg2: memref<128x128xbf16, #tpu.memory_space<vmem>>, %arg3: memref<128x128xbf16, #tpu.memory_space<vmem>>, %arg4: memref<128x1xf32, #tpu.memory_space<vmem>>, %arg5: memref<128x128xf32, #tpu.memory_space<vmem>>, %arg6: memref<1x128xf32, #tpu.memory_space<vmem>>, %arg7: memref<128x128xf32, #tpu.memory_space<vmem>>, %arg8: memref<128x128xf32, #tpu.memory_space<vmem>>) attributes {dimension_semantics = [#tpu.dimension_semantics<parallel>, #tpu.dimension_semantics<arbitrary>], iteration_bounds = array<i64: 1, 1>, scalar_prefetch = 0 : i64, scratch_operands = 1 : i64, tpu.core_type = #tpu.core_type<tc>, window_params = [{transform_indices = @transform_0, window_bounds = array<i64: 128, 128>}, {transform_indices = @transform_1, window_bounds = array<i64: 128, 128>}, {transform_indices = @transform_2, window_bounds = array<i64: 128, 1>}, {pipeline_mode = #tpu.pipeline_mode<synchronous>, transform_indices = @transform_3, window_bounds = array<i64: 128, 128>}, {pipeline_mode = #tpu.pipeline_mode<synchronous>, transform_indices = @transform_4, window_bounds = array<i64: 1, 128>}, {transform_indices = @transform_5, window_bounds = array<i64: 128, 128>}]} {
    %c0_i32 = arith.constant 0 : i32
    %0 = arith.cmpi eq, %arg1, %c0_i32 : i32
    %1 = arith.extui %0 : i1 to i32
    %c0_i32_0 = arith.constant 0 : i32
    %2 = arith.cmpi ne, %1, %c0_i32_0 : i32
    scf.if %2 {
      %cst_10 = arith.constant 0.000000e+00 : f32
      %12 = vector.broadcast %cst_10 : f32 to vector<128x128xf32>
      %c0_11 = arith.constant 0 : index
      %c0_12 = arith.constant 0 : index
      %13 = vector.load %arg8[%c0_11, %c0_12] : memref<128x128xf32, #tpu.memory_space<vmem>>, vector<128x128xf32>
      tpu.vector_store %arg8[%c0_11, %c0_12], %12 {strides = array<i32>} : memref<128x128xf32, #tpu.memory_space<vmem>>, vector<128x128xf32>,
    } else {
    }
    %c0 = arith.constant 0 : index
    %c0_1 = arith.constant 0 : index
    %3 = vector.load %arg8[%c0, %c0_1] : memref<128x128xf32, #tpu.memory_space<vmem>>, vector<128x128xf32>
    %c0_2 = arith.constant 0 : index
    %c0_3 = arith.constant 0 : index
    %4 = vector.load %arg2[%c0_2, %c0_3] : memref<128x128xbf16, #tpu.memory_space<vmem>>, vector<128x128xbf16>
    %c0_4 = arith.constant 0 : index
    %c0_5 = arith.constant 0 : index
    %5 = vector.load %arg3[%c0_4, %c0_5] : memref<128x128xbf16, #tpu.memory_space<vmem>>, vector<128x128xbf16>
    %cst = arith.constant dense<0.000000e+00> : vector<128x128xf32>
    %6 = tpu.matmul %4, %5, %cst {dimension_numbers = #tpu.dot_dimension_numbers<[1], [0], [0], [1], [0, 0, 1, 1], [], []>} : vector<128x128xbf16>, vector<128x128xbf16>, vector<128x128xf32> -> vector<128x128xf32>
    %7 = arith.addf %3, %6 : vector<128x128xf32>
    %c0_6 = arith.constant 0 : index
    %c0_7 = arith.constant 0 : index
    %8 = vector.load %arg8[%c0_6, %c0_7] : memref<128x128xf32, #tpu.memory_space<vmem>>, vector<128x128xf32>
    tpu.vector_store %arg8[%c0_6, %c0_7], %7 {strides = array<i32>} : memref<128x128xf32, #tpu.memory_space<vmem>>, vector<128x128xf32>,
    %c0_i32_8 = arith.constant 0 : i32
    %9 = arith.cmpi eq, %arg1, %c0_i32_8 : i32
    %10 = arith.extui %9 : i1 to i32
    %c0_i32_9 = arith.constant 0 : i32
    %11 = arith.cmpi ne, %10, %c0_i32_9 : i32
    scf.if %11 {
      %c0_10 = arith.constant 0 : index
      %c0_11 = arith.constant 0 : index
      %12 = vector.load %arg4[%c0_10, %c0_11] : memref<128x1xf32, #tpu.memory_space<vmem>>, vector<128x1xf32>
      %c0_12 = arith.constant 0 : index
      %c0_13 = arith.constant 0 : index
      %13 = vector.load %arg8[%c0_12, %c0_13] : memref<128x128xf32, #tpu.memory_space<vmem>>, vector<128x128xf32>
      %14 = vector.broadcast %12 : vector<128x1xf32> to vector<128x128xf32>
      %15 = arith.mulf %14, %13 : vector<128x128xf32>
      %c0_14 = arith.constant 0 : index
      %c0_15 = arith.constant 0 : index
      %16 = vector.load %arg5[%c0_14, %c0_15] : memref<128x128xf32, #tpu.memory_space<vmem>>, vector<128x128xf32>
      %cst_16 = arith.constant dense<0.000000e+00> : vector<128x128xf32>
      %17 = tpu.matmul %15, %16, %cst_16 {dimension_numbers = #tpu.dot_dimension_numbers<[1], [0], [0], [1], [0, 0, 1, 1], [], []>} : vector<128x128xf32>, vector<128x128xf32>, vector<128x128xf32> -> vector<128x128xf32>
      %c0_17 = arith.constant 0 : index
      %c0_18 = arith.constant 0 : index
      %18 = vector.load %arg6[%c0_17, %c0_18] : memref<1x128xf32, #tpu.memory_space<vmem>>, vector<1x128xf32>
      %19 = vector.broadcast %18 : vector<1x128xf32> to vector<128x128xf32>
      %20 = arith.addf %17, %19 : vector<128x128xf32>
      %cst_19 = arith.constant 0.000000e+00 : f32
      %21 = vector.broadcast %cst_19 : f32 to vector<128x128xf32>
      %22 = arith.maximumf %20, %21 : vector<128x128xf32>
      %c0_20 = arith.constant 0 : index
      %c0_21 = arith.constant 0 : index
      %23 = vector.load %arg7[%c0_20, %c0_21] : memref<128x128xf32, #tpu.memory_space<vmem>>, vector<128x128xf32>
      tpu.vector_store %arg7[%c0_20, %c0_21], %22 {strides = array<i32>} : memref<128x128xf32, #tpu.memory_space<vmem>>, vector<128x128xf32>,
    } else {
    }
    return
  }
  func.func @transform_0(%arg0: i32, %arg1: i32) -> (i32, i32) {
    %c0_i32 = arith.constant 0 : i32
    return %arg0, %arg1 : i32, i32
  }
  func.func @transform_1(%arg0: i32, %arg1: i32) -> (i32, i32) {
    %c0_i32 = arith.constant 0 : i32
    %c0_i32_0 = arith.constant 0 : i32
    return %arg1, %c0_i32 : i32, i32
  }
  func.func @transform_2(%arg0: i32, %arg1: i32) -> (i32, i32) {
    %c0_i32 = arith.constant 0 : i32
    %c0_i32_0 = arith.constant 0 : i32
    return %arg0, %c0_i32 : i32, i32
  }
  func.func @transform_3(%arg0: i32, %arg1: i32) -> (i32, i32) {
    %c0_i32 = arith.constant 0 : i32
    %c0_i32_0 = arith.constant 0 : i32
    %c0_i32_1 = arith.constant 0 : i32
    return %c0_i32, %c0_i32_0 : i32, i32
  }
  func.func @transform_4(%arg0: i32, %arg1: i32) -> (i32, i32) {
    %c0_i32 = arith.constant 0 : i32
    %c0_i32_0 = arith.constant 0 : i32
    %c0_i32_1 = arith.constant 0 : i32
    return %c0_i32, %c0_i32_0 : i32, i32
  }
  func.func @transform_5(%arg0: i32, %arg1: i32) -> (i32, i32) {
    %c0_i32 = arith.constant 0 : i32
    %c0_i32_0 = arith.constant 0 : i32
    return %arg0, %c0_i32 : i32, i32
  }
}

</mosaic_0001>

<bundles_post_ra>
// kernel: tpu_custom_call.1
= control target key start
LH: loop header
LB: loop body
LE: loop exit
PB: predicated region body
PF: predicated region fallthrough
CT: control target
= control target key end

     0   :  { %10 = vsyncpa [#allocation4], 0  ;;  %s924_s0 = inlined_call_operand.hbm [shape: bf16[128,128], index: 0, kind: input, shape index: {}]   ;;  %s925_s1 = inlined_call_operand.hbm [shape: bf16[128,128], index: 1, kind: input, shape index: {}]   ;;  %s926_s2 = inlined_call_operand.vmem [shape: f32[128,1], index: 2, kind: input, shape index: {}]   ;;  %s927_s3 = inlined_call_operand.vmem [shape: f32[128,128], index: 3, kind: input, shape index: {}]   ;;  %s928_s4 = inlined_call_operand.vmem [shape: f32[1,128], index: 4, kind: input, shape index: {}]   ;;  %s929_s5 = inlined_call_operand.hbm [shape: f32[128,128], index: 5, kind: output, shape index: {}]  }
   0x1   :  { %11 = vsyncpa [#allocation7], 0 }
   0x2   :  { %12 = vsyncpa [#allocation5], 0  ;;  %s17_s20 = sshll.u32 %s924_s0, 4  ;;  %s760_s21 = smov [#allocation3]   ;;  %s18_s20 = int_to_ptr.hbm [resolvable:$true] %s17_s20 }
   0x3   :  { %s19_s22 = sshll.u32 %s760_s21, 4  ;;  %s30_s25 = sshll.u32 %s925_s1, 4  ;;  %s20_s22 = int_to_ptr.vmem [resolvable:$true] %s19_s22  ;;  %s31_s25 = int_to_ptr.hbm [resolvable:$true] %s30_s25 }
   0x4   :  { %s761_s26 = smov 64   ;;  %s762_s27 = smov 4  }
   0x5   :  { %25 = dma.hbm_to_vmem [thread:$0]  %s18_s20, 1024, %s20_s22, [#allocation4], %s761_s26, %s761_s26, %s762_s27  }
   0x6   :  { %s763_s28 = smov [#allocation6]  }
   0x7   :  { %s32_s29 = sshll.u32 %s763_s28, 4  ;;  %s33_s29 = int_to_ptr.vmem [resolvable:$true] %s32_s29 }
   0x8   :  { %38 = dma.hbm_to_vmem [thread:$0]  %s31_s25, 1024, %s33_s29, [#allocation7], %s761_s26, %s761_s26, %s762_s27  }
   0x9   :  { %754 = dma.done.wait [#allocation4], 1024  }
   0xa   :  { %755 = vsyncadd [#allocation4], 4294966272 }
   0xb   :  { %756 = dma.done.wait [#allocation7], 1024  }
   0xc   :  { %757 = vsyncadd [#allocation7], 4294966272  ;;  %v764_v0 = vmov 0   ;;  %v645_v1 = vld [vmem:[#allocation6 + $0x38] sm:$0xff]  ;;  %v309_v2 = vld [vmem:[%s926_s2 + $0x40] sm:$0xff]  ;;  %s552_s15 = sshll.u32 %s929_s5, 4  ;;  %s553_s15 = int_to_ptr.hbm [resolvable:$true] %s552_s15 }
   0xd   :  { %678 = vset.pattern.permute.xlu0 %v764_v0  ;;  %679 = vset.pattern.permute.xlu1 %v764_v0  ;;  %v644_v3 = vld [vmem:[#allocation6 + $0x30] sm:$0xff]  ;;  %v310_v4 = vld [vmem:[%s926_s2 + $0x48] sm:$0xff]  ;;  %v301_v6 = vld [vmem:[%s926_s2] sm:$0xff]  ;;  %s766_s16 = smov 128   ;;  %s767_s17 = smov 8  }
   0xe   :  { %680 = vset.pattern.permute.xlu2 %v764_v0  ;;  %375 = vperm.xlu0 %678, %v309_v2   ;;  %v643_v5 = vld [vmem:[#allocation6 + $0x28] sm:$0xff]  ;;  %v642_v8 = vld [vmem:[#allocation6 + $0x20] sm:$0xff]  ;;  %v641_v9 = vld [vmem:[#allocation6 + $0x18] sm:$0xff] }
   0xf   :  { %217 = vmatpush.bf16.msra.mxu0 %v645_v1  ;;  %646 = vmatpush.bf16.msra.mxu2 %v645_v1  ;;  %v302_v7 = vld [vmem:[%s926_s2 + $0x8] sm:$0xff]  ;;  %v312_v10 = vld [vmem:[%s926_s2 + $0x58] sm:$0xff]  ;;  %v311_v12 = vld [vmem:[%s926_s2 + $0x50] sm:$0xff] }
  0x10   :  { %380 = vperm.xlu1 %679, %v310_v4   ;;  %v304_v11 = vld [vmem:[%s926_s2 + $0x18] sm:$0xff]  ;;  %v640_v13 = vld [vmem:[#allocation6 + $0x10] sm:$0xff]  ;;  %385 = vperm.xlu2 %680, %v311_v12   ;;  %v639_v14 = vld [vmem:[#allocation6 + $0x8] sm:$0xff] }
  0x11   :  { %v305_v15 = vld [vmem:[%s926_s2 + $0x20] sm:$0xff]  ;;  %v314_v16 = vld [vmem:[%s926_s2 + $0x68] sm:$0xff]  ;;  %v303_v17 = vld [vmem:[%s926_s2 + $0x10] sm:$0xff] }
  0x12   :  { %v638_v18 = vld [vmem:[#allocation6] sm:$0xff]  ;;  %v315_v21 = vld [vmem:[%s926_s2 + $0x70] sm:$0xff]  ;;  %v308_v24 = vld [vmem:[%s926_s2 + $0x38] sm:$0xff] }
  0x13   :  { %218 = vmatpush.bf16.msra.mxu0 %v644_v3  ;;  %647 = vmatpush.bf16.msra.mxu2 %v644_v3  ;;  %v630_v19 = vld [vmem:[#allocation3] sm:$0xff]  ;;  %v307_v22 = vld [vmem:[%s926_s2 + $0x30] sm:$0xff]  ;;  %v306_v25 = vld [vmem:[%s926_s2 + $0x28] sm:$0xff] }
  0x14   :  { %v634_v20 = vld [vmem:[#allocation3 + $0x20] sm:$0xff]  ;;  %v631_v26 = vld [vmem:[#allocation3 + $0x8] sm:$0xff]  ;;  %v316_v28 = vld [vmem:[%s926_s2 + $0x78] sm:$0xff] }
  0x15   :  { %v313_v23 = vld [vmem:[%s926_s2 + $0x60] sm:$0xff]  ;;  %v635_v27 = vld [vmem:[#allocation3 + $0x28] sm:$0xff]  ;;  %v632_v29 = vld [vmem:[#allocation3 + $0x10] sm:$0xff] }
  0x16   :  { %335 = vperm.xlu0 %678, %v301_v6   ;;  %v636_v30 = vld [vmem:[#allocation3 + $0x30] sm:$0xff]  ;;  %v633_v31 = vld [vmem:[#allocation3 + $0x18] sm:$0xff]  ;;  %v442_v35 = vld [vmem:[%s927_s3 + $0x68] sm:$0xff] }
  0x17   :  { %219 = vmatpush.bf16.msra.mxu0 %v643_v5  ;;  %648 = vmatpush.bf16.msra.mxu2 %v643_v5  ;;  %v637_v32 = vld [vmem:[#allocation3 + $0x38] sm:$0xff]  ;;  %v443_v34 = vld [vmem:[%s927_s3 + $0x70] sm:$0xff]  ;;  %v441_v36 = vld [vmem:[%s927_s3 + $0x60] sm:$0xff] }
  0x18   :  { %340 = vperm.xlu1 %679, %v302_v7   ;;  %345 = vperm.xlu2 %680, %v303_v17   ;;  %v444_v33 = vld [vmem:[%s927_s3 + $0x78] sm:$0xff]  ;;  %v439_v38 = vld [vmem:[%s927_s3 + $0x50] sm:$0xff]  ;;  %v438_v39 = vld [vmem:[%s927_s3 + $0x48] sm:$0xff] }
  0x19   :  { %449 = vmatpush.msra.mxu1 %v444_v33  ;;  %654 = vmatpush.msra.mxu3 %v444_v33  ;;  %v440_v37 = vld [vmem:[%s927_s3 + $0x58] sm:$0xff]  ;;  %v437_v40 = vld [vmem:[%s927_s3 + $0x40] sm:$0xff]  ;;  %v435_v42 = vld [vmem:[%s927_s3 + $0x30] sm:$0xff] }
  0x1a   :  { %v436_v41 = vld [vmem:[%s927_s3 + $0x38] sm:$0xff]  ;;  %v434_v43 = vld [vmem:[%s927_s3 + $0x28] sm:$0xff]  ;;  %v433_v44 = vld [vmem:[%s927_s3 + $0x20] sm:$0xff] }
  0x1b   :  { %220 = vmatpush.bf16.msra.mxu0 %v642_v8  ;;  %649 = vmatpush.bf16.msra.mxu2 %v642_v8  ;;  %v432_v45 = vld [vmem:[%s927_s3 + $0x18] sm:$0xff]  ;;  %v431_v46 = vld [vmem:[%s927_s3 + $0x10] sm:$0xff]  ;;  %v430_v47 = vld [vmem:[%s927_s3 + $0x8] sm:$0xff] }
  0x1c   :  { %450 = vmatpush.msra.mxu1 %v443_v34  ;;  %655 = vmatpush.msra.mxu3 %v443_v34  ;;  %v429_v48 = vld [vmem:[%s927_s3] sm:$0xff] }
  0x1d   :  { %v903_v33 = vld [vmem:[%s928_s4] ss:$0 sm:$0xff]  ;;  %s765_s4 = smov [#allocation8]  }
  0x1e   :  { %390 = vperm.xlu0 %678, %v312_v10   ;;  %451 = vmatpush.msra.mxu1 %v442_v35  ;;  %s550_s12 = sshll.u32 %s765_s4, 4  ;;  %s551_s12 = int_to_ptr.vmem [resolvable:$true] %s550_s12 }
  0x1f   :  { %221 = vmatpush.bf16.msra.mxu0 %v641_v9  ;;  %650 = vmatpush.bf16.msra.mxu2 %v641_v9 }
  0x20   :  { %350 = vperm.xlu1 %679, %v304_v11   ;;  %395 = vperm.xlu2 %680, %v313_v23  }
  0x21   :  { %656 = vmatpush.msra.mxu3 %v442_v35  ;;  %452 = vmatpush.msra.mxu1 %v441_v36 }
  0x23   :  { %222 = vmatpush.bf16.msra.mxu0 %v640_v13  ;;  %651 = vmatpush.bf16.msra.mxu2 %v640_v13 }
  0x24   :  { %657 = vmatpush.msra.mxu3 %v441_v36  ;;  %453 = vmatpush.msra.mxu1 %v440_v37 }
  0x26   :  { %355 = vperm.xlu0 %678, %v305_v15   ;;  %658 = vmatpush.msra.mxu3 %v440_v37 }
  0x27   :  { %223 = vmatpush.bf16.msra.mxu0 %v639_v14  ;;  %652 = vmatpush.bf16.msra.mxu2 %v639_v14 }
  0x28   :  { %400 = vperm.xlu1 %679, %v314_v16   ;;  %360 = vperm.xlu2 %680, %v306_v25  }
  0x29   :  { %454 = vmatpush.msra.mxu1 %v439_v38  ;;  %659 = vmatpush.msra.mxu3 %v439_v38 }
  0x2b   :  { %224 = vmatpush.bf16.msra.mxu0 %v638_v18  ;;  %653 = vmatpush.bf16.msra.mxu2 %v638_v18 }
  0x2c   :  { %455 = vmatpush.msra.mxu1 %v438_v39  ;;  %660 = vmatpush.msra.mxu3 %v438_v39 }
  0x2e   :  { %225 = vmatmul.bf16.vlgmr.msra.gmra.mxu0 %v630_v19  ;;  %245 = vmatmul.bf16.vlgmr.msra.gmra.mxu2 %v634_v20 }
  0x2f   :  { %405 = vperm.xlu0 %678, %v315_v21   ;;  %456 = vmatpush.msra.mxu1 %v437_v40 }
  0x30   :  { %365 = vperm.xlu1 %679, %v307_v22   ;;  %410 = vperm.xlu2 %680, %v316_v28  }
  0x31   :  { %661 = vmatpush.msra.mxu3 %v437_v40  ;;  %457 = vmatpush.msra.mxu1 %v436_v41 }
  0x33   :  { %662 = vmatpush.msra.mxu3 %v436_v41  ;;  %458 = vmatpush.msra.mxu1 %v435_v42 }
  0x35   :  { %663 = vmatpush.msra.mxu3 %v435_v42  ;;  %459 = vmatpush.msra.mxu1 %v434_v43 }
  0x37   :  { %370 = vperm.xlu0 %678, %v308_v24   ;;  %664 = vmatpush.msra.mxu3 %v434_v43 }
  0x38   :  { %460 = vmatpush.msra.mxu1 %v433_v44 }
  0x39   :  { %665 = vmatpush.msra.mxu3 %v433_v44 }
  0x3a   :  { %461 = vmatpush.msra.mxu1 %v432_v45 }
  0x3b   :  { %666 = vmatpush.msra.mxu3 %v432_v45 }
  0x3c   :  { %462 = vmatpush.msra.mxu1 %v431_v46 }
  0x3d   :  { %667 = vmatpush.msra.mxu3 %v431_v46 }
  0x3e   :  { %230 = vmatmul.bf16.gmra.mxu0 %v631_v26  ;;  %250 = vmatmul.bf16.gmra.mxu2 %v635_v27 }
  0x3f   :  { %463 = vmatpush.msra.mxu1 %v430_v47  ;;  %668 = vmatpush.msra.mxu3 %v430_v47 }
  0x41   :  { %464 = vmatpush.msra.mxu1 %v429_v48  ;;  %669 = vmatpush.msra.mxu3 %v429_v48 }
  0x4e   :  { %235 = vmatmul.bf16.gmra.mxu0 %v632_v29  ;;  %255 = vmatmul.bf16.gmra.mxu2 %v636_v30 }
  0x5e   :  { %240 = vmatmul.bf16.gmra.mxu0 %v633_v31  ;;  %260 = vmatmul.bf16.gmra.mxu2 %v637_v32 }
  0x6a   :  { %v386_v54 = vpop.permute.xlu2 %385 }
  0x72   :  { %v346_v62 = vpop.permute.xlu2 %345 }
  0x7a   :  { %v396_v7 = vpop.permute.xlu2 %395 }
  0x80   :  { %v376_v49 = vpop.permute.xlu0 %375 }
  0x82   :  { %v381_v50 = vpop.permute.xlu1 %380  ;;  %v361_v16 = vpop.permute.xlu2 %360 }
  0x88   :  { %v336_v51 = vpop.permute.xlu0 %335 }
  0x8a   :  { %v341_v57 = vpop.permute.xlu1 %340  ;;  %v411_v30 = vpop.permute.xlu2 %410 }
  0x90   :  { %v391_v1 = vpop.permute.xlu0 %390 }
  0x92   :  { %v351_v4 = vpop.permute.xlu1 %350 }
  0x98   :  { %v356_v10 = vpop.permute.xlu0 %355 }
  0x9a   :  { %v401_v13 = vpop.permute.xlu1 %400 }
  0xa1   :  { %v406_v19 = vpop.permute.xlu0 %405 }
  0xa2   :  { %v366_v22 = vpop.permute.xlu1 %365 }
  0xa9   :  { %v371_v27 = vpop.permute.xlu0 %370 }
  0xab   :  { %v226_v52 = vpop.f32.mrf.mxu0 }
  0xac   :  { %v413_v53 = vmul.f32 %v336_v51, %v226_v52 }
  0xae   :  { %465 = vmatmul.f32.vlgmr.msra.gmra.mxu1 %v413_v53 }
  0xb1   :  { %v246_v55 = vpop.f32.mrf.mxu2 }
  0xb2   :  { %v421_v56 = vmul.f32 %v376_v49, %v246_v55 }
  0xb3   :  { %v228_v58 = vpop.f32.mrf.mxu0 }
  0xb4   :  { %v414_v59 = vmul.f32 %v341_v57, %v228_v58  ;;  %489 = vmatmul.f32.vlgmr.msra.gmra.mxu3 %v421_v56 }
  0xb6   :  { %468 = vmatmul.f32.gmra.mxu1 %v414_v59 }
  0xb9   :  { %v248_v60 = vpop.f32.mrf.mxu2 }
  0xba   :  { %v422_v61 = vmul.f32 %v381_v50, %v248_v60 }
  0xbb   :  { %v231_v63 = vpop.f32.mrf.mxu0 }
  0xbc   :  { %v415_v0 = vmul.f32 %v346_v62, %v231_v63  ;;  %492 = vmatmul.f32.gmra.mxu3 %v422_v61 }
  0xbe   :  { %471 = vmatmul.f32.gmra.mxu1 %v415_v0 }
  0xc1   :  { %v251_v2 = vpop.f32.mrf.mxu2 }
  0xc2   :  { %v423_v3 = vmul.f32 %v386_v54, %v251_v2 }
  0xc3   :  { %v233_v5 = vpop.f32.mrf.mxu0 }
  0xc4   :  { %v416_v6 = vmul.f32 %v351_v4, %v233_v5  ;;  %495 = vmatmul.f32.gmra.mxu3 %v423_v3 }
  0xc6   :  { %474 = vmatmul.f32.gmra.mxu1 %v416_v6 }
  0xc9   :  { %v253_v8 = vpop.f32.mrf.mxu2 }
  0xca   :  { %v424_v9 = vmul.f32 %v391_v1, %v253_v8 }
  0xcb   :  { %v236_v11 = vpop.f32.mrf.mxu0 }
  0xcc   :  { %v417_v12 = vmul.f32 %v356_v10, %v236_v11  ;;  %498 = vmatmul.f32.gmra.mxu3 %v424_v9 }
  0xce   :  { %477 = vmatmul.f32.gmra.mxu1 %v417_v12 }
  0xd1   :  { %v256_v14 = vpop.f32.mrf.mxu2 }
  0xd2   :  { %v425_v15 = vmul.f32 %v396_v7, %v256_v14 }
  0xd3   :  { %v238_v17 = vpop.f32.mrf.mxu0 }
  0xd4   :  { %v418_v18 = vmul.f32 %v361_v16, %v238_v17  ;;  %501 = vmatmul.f32.gmra.mxu3 %v425_v15 }
  0xd6   :  { %480 = vmatmul.f32.gmra.mxu1 %v418_v18 }
  0xd9   :  { %v258_v20 = vpop.f32.mrf.mxu2 }
  0xda   :  { %v426_v21 = vmul.f32 %v401_v13, %v258_v20 }
  0xdb   :  { %v241_v23 = vpop.f32.mrf.mxu0 }
  0xdc   :  { %v419_v24 = vmul.f32 %v366_v22, %v241_v23  ;;  %504 = vmatmul.f32.gmra.mxu3 %v426_v21 }
  0xde   :  { %483 = vmatmul.f32.gmra.mxu1 %v419_v24 }
  0xe1   :  { %v261_v25 = vpop.f32.mrf.mxu2 }
  0xe2   :  { %v427_v26 = vmul.f32 %v406_v19, %v261_v25 }
  0xe3   :  { %v243_v28 = vpop.f32.mrf.mxu0 }
  0xe4   :  { %v420_v29 = vmul.f32 %v371_v27, %v243_v28  ;;  %507 = vmatmul.f32.gmra.mxu3 %v427_v26 }
  0xe6   :  { %486 = vmatmul.f32.gmra.mxu1 %v420_v29 }
  0xe9   :  { %v263_v31 = vpop.f32.mrf.mxu2 }
  0xea   :  { %v428_v32 = vmul.f32 %v411_v30, %v263_v31 }
  0xec   :  { %510 = vmatmul.f32.gmra.mxu3 %v428_v32 }
 0x12b   :  { %v466_v34 = vpop.f32.mrf.mxu1 }
 0x12c   :  { %v467_v35 = vadd.f32 %v903_v33, %v466_v34 }
 0x12e   :  { %v514_v36 = vmax.f32 %v467_v35, 0.0 }
 0x130   :  { %530 = vst [vmem:[#allocation8] sm:$0xff] %v514_v36 }
 0x133   :  { %v469_v37 = vpop.f32.mrf.mxu1 }
 0x134   :  { %v470_v38 = vadd.f32 %v903_v33, %v469_v37 }
 0x136   :  { %v515_v39 = vmax.f32 %v470_v38, 0.0 }
 0x137   :  { %v490_v40 = vpop.f32.mrf.mxu3 }
 0x138   :  { %531 = vst [vmem:[#allocation8 + $0x8] sm:$0xff] %v515_v39  ;;  %v491_v41 = vadd.f32 %v903_v33, %v490_v40 }
 0x13a   :  { %v522_v42 = vmax.f32 %v491_v41, 0.0 }
 0x13b   :  { %v472_v43 = vpop.f32.mrf.mxu1 }
 0x13c   :  { %538 = vst [vmem:[#allocation8 + $0x40] sm:$0xff] %v522_v42  ;;  %v473_v44 = vadd.f32 %v903_v33, %v472_v43 }
 0x13e   :  { %v516_v45 = vmax.f32 %v473_v44, 0.0 }
 0x13f   :  { %v493_v46 = vpop.f32.mrf.mxu3 }
 0x140   :  { %532 = vst [vmem:[#allocation8 + $0x10] sm:$0xff] %v516_v45  ;;  %v494_v47 = vadd.f32 %v903_v33, %v493_v46 }
 0x142   :  { %v523_v48 = vmax.f32 %v494_v47, 0.0 }
 0x143   :  { %v475_v49 = vpop.f32.mrf.mxu1 }
 0x144   :  { %539 = vst [vmem:[#allocation8 + $0x48] sm:$0xff] %v523_v48  ;;  %v476_v50 = vadd.f32 %v903_v33, %v475_v49 }
 0x146   :  { %v517_v51 = vmax.f32 %v476_v50, 0.0 }
 0x147   :  { %v496_v52 = vpop.f32.mrf.mxu3 }
 0x148   :  { %533 = vst [vmem:[#allocation8 + $0x18] sm:$0xff] %v517_v51  ;;  %v497_v53 = vadd.f32 %v903_v33, %v496_v52 }
 0x14a   :  { %v524_v54 = vmax.f32 %v497_v53, 0.0 }
 0x14b   :  { %v478_v55 = vpop.f32.mrf.mxu1 }
 0x14c   :  { %540 = vst [vmem:[#allocation8 + $0x50] sm:$0xff] %v524_v54  ;;  %v479_v56 = vadd.f32 %v903_v33, %v478_v55 }
 0x14e   :  { %v518_v57 = vmax.f32 %v479_v56, 0.0 }
 0x14f   :  { %v499_v58 = vpop.f32.mrf.mxu3 }
 0x150   :  { %534 = vst [vmem:[#allocation8 + $0x20] sm:$0xff] %v518_v57  ;;  %v500_v59 = vadd.f32 %v903_v33, %v499_v58 }
 0x152   :  { %v525_v60 = vmax.f32 %v500_v59, 0.0 }
 0x153   :  { %v481_v61 = vpop.f32.mrf.mxu1 }
 0x154   :  { %541 = vst [vmem:[#allocation8 + $0x58] sm:$0xff] %v525_v60  ;;  %v482_v62 = vadd.f32 %v903_v33, %v481_v61 }
 0x156   :  { %v519_v63 = vmax.f32 %v482_v62, 0.0 }
 0x157   :  { %v502_v0 = vpop.f32.mrf.mxu3 }
 0x158   :  { %535 = vst [vmem:[#allocation8 + $0x28] sm:$0xff] %v519_v63  ;;  %v503_v1 = vadd.f32 %v903_v33, %v502_v0 }
 0x15a   :  { %v526_v2 = vmax.f32 %v503_v1, 0.0 }
 0x15b   :  { %v484_v3 = vpop.f32.mrf.mxu1 }
 0x15c   :  { %542 = vst [vmem:[#allocation8 + $0x60] sm:$0xff] %v526_v2  ;;  %v485_v4 = vadd.f32 %v903_v33, %v484_v3 }
 0x15e   :  { %v520_v5 = vmax.f32 %v485_v4, 0.0 }
 0x15f   :  { %v505_v6 = vpop.f32.mrf.mxu3 }
 0x160   :  { %536 = vst [vmem:[#allocation8 + $0x30] sm:$0xff] %v520_v5  ;;  %v506_v7 = vadd.f32 %v903_v33, %v505_v6 }
 0x162   :  { %v527_v8 = vmax.f32 %v506_v7, 0.0 }
 0x163   :  { %v487_v9 = vpop.f32.mrf.mxu1 }
 0x164   :  { %543 = vst [vmem:[#allocation8 + $0x68] sm:$0xff] %v527_v8  ;;  %v488_v10 = vadd.f32 %v903_v33, %v487_v9 }
 0x166   :  { %v521_v11 = vmax.f32 %v488_v10, 0.0 }
 0x167   :  { %v508_v12 = vpop.f32.mrf.mxu3 }
 0x168   :  { %537 = vst [vmem:[#allocation8 + $0x38] sm:$0xff] %v521_v11  ;;  %v509_v13 = vadd.f32 %v903_v33, %v508_v12 }
 0x16a   :  { %v528_v14 = vmax.f32 %v509_v13, 0.0 }
 0x16c   :  { %544 = vst [vmem:[#allocation8 + $0x70] sm:$0xff] %v528_v14 }
 0x16f   :  { %v511_v15 = vpop.f32.mrf.mxu3 }
 0x170   :  { %v512_v16 = vadd.f32 %v903_v33, %v511_v15 }
 0x172   :  { %v529_v17 = vmax.f32 %v512_v16, 0.0 }
 0x174   :  { %545 = vst [vmem:[#allocation8 + $0x78] sm:$0xff] %v529_v17 }
 0x175   :  { %558 = dma.vmem_to_hbm [thread:$0]  %s551_s12, 2048, %s553_s15, [#allocation5], %s766_s16, %s766_s16, %s767_s17  }
 0x176   :  { %758 = dma.done.wait [#allocation5], 2048  }
 0x177   :  { %759 = vsyncadd [#allocation5], 4294965248 }
 0x178   :  { %563 = vsyncpa [#allocation4], 1 }
 0x179   :  { %564 = vsyncpa [#allocation7], 1 }
 0x17a   :  { %565 = vsyncpa [#allocation5], 1 }

</bundles_post_ra>
